<compile_context>
chip_gen: v7x
topology: tpu7x:2x2x1
jax: 0.10.0
libtpu: 0.0.40
codegen_flags: <defaults>
</compile_context>

<pallas_src>
import functools

import jax
import jax.numpy as jnp
from jax.experimental import pallas as pl
from jax.experimental.pallas import tpu as pltpu


def _round_up(x: int, m: int) -> int:
    return ((x + m - 1) // m) * m


# ----------------------------------------------------------------------------- kernels
def _rbf_vpu_kernel(x_ref, ct_ref, p_ref, o_ref, *, der: int, d: int):
    """Tiny-D path: direct (x - c)^2 accumulation on the VPU (exact, no MXU)."""
    x = x_ref[...].astype(jnp.float32)            # (tb, D)
    ct = ct_ref[...].astype(jnp.float32)          # (D, tc)  centers pre-transposed
    p = p_ref[...]                                # (8, tc)  grid-invariant constants
    inv = p[1:2, :]                               # 1/(sigma+eps)

    diff = x[:, 0:1] - ct[0:1, :]                 # init from first term (no zeros pass)
    X = diff * diff
    for dd in range(1, d):                        # unrolled; d is tiny & static
        diff = x[:, dd:dd + 1] - ct[dd:dd + 1, :]
        X = X + diff * diff

    e = jnp.exp(-X * inv)
    if der == 0:
        out = e
    else:  # der == 2
        out = (X * p[2:3, :] - p[3:4, :]) * e     # 4/(s)^2, 2/s precomputed
    o_ref[...] = out.astype(o_ref.dtype)


def _rbf_mxu_kernel(xn_ref, x_ref, ct_ref, p_ref, o_ref, acc_ref, *, der: int):
    """MXU path with K-tiling: ||x-c||^2 = ||x||^2 + ||c||^2 + x.(-2 c^T)."""
    k = pl.program_id(2)

    @pl.when(k == 0)
    def _():
        acc_ref[...] = jnp.zeros_like(acc_ref)

    # ct already carries the -2 factor (folded in the wrapper), so this accumulates
    # -2 * x . c^T over feature tiles — no extra per-step VPU multiply needed.
    acc_ref[...] += jnp.dot(x_ref[...], ct_ref[...],
                            preferred_element_type=jnp.float32)

    @pl.when(k == pl.num_programs(2) - 1)
    def _():
        p = p_ref[...]                            # (8, tc)
        cn = p[0:1, :]                            # ||c||^2
        inv = p[1:2, :]                           # 1/(sigma+eps)
        xn = xn_ref[...]                          # (tb, 1) ||x||^2 (precomputed)
        # clamp guards catastrophic cancellation of the expansion
        X = jnp.maximum(xn + cn + acc_ref[...], 0.0)
        e = jnp.exp(-X * inv)
        if der == 0:
            out = e
        else:  # der == 2
            out = (X * p[2:3, :] - p[3:4, :]) * e
        o_ref[...] = out.astype(o_ref.dtype)


# ----------------------------------------------------------------------------- wrapper
def rbf_forward(x, centers, sigma, der=0, *, out_dtype=None):
    """x: (B, D); centers: (C, D); sigma: (C,). Returns (B, C) RBF activations."""
    if der not in (0, 2):
        raise ValueError("der must be 0 or 2")
    B, D = x.shape
    C, Dc = centers.shape
    assert D == Dc
    if out_dtype is None:
        out_dtype = x.dtype                       # bf16 callers get bf16 writes

    eps = 1e-6
    c32 = centers.astype(jnp.float32)
    s32 = sigma.astype(jnp.float32).reshape(C)
    inv = 1.0 / (s32 + eps)

    use_mxu = D >= 8                              # VPU path only for tiny D (1..7)

    # ---- generation-aware VMEM budget ---------------------------------------
    try:
        phys_vmem = int(pltpu.get_tpu_info().vmem_capacity_bytes)
    except Exception:
        phys_vmem = 64 * 1024 * 1024              # conservative (v7x per-core)
    budget = phys_vmem // 2                       # headroom for compiler scratch

    x_item = jnp.dtype(x.dtype).itemsize
    ct_item = jnp.dtype(centers.dtype).itemsize
    out_item = jnp.dtype(out_dtype).itemsize

    # ---- tile selection ------------------------------------------------------
    if use_mxu and D > 512:
        block_d = 512                             # K-tiling (multiple of 128)
        D_pad = _round_up(D, block_d)
    else:
        block_d = D                               # full-extent feature dim
        D_pad = D

    small_d = D <= 128                            # output-write-bound regime
    bb_cap = 1024 if small_d else 512
    bc_cap = 1024 if small_d else 512
    block_b = min(bb_cap, _round_up(B, 8))
    block_c = min(bc_cap, _round_up(C, 128))      # lane-dense output blocks

    def working(bb, bc):
        per_step = (bb * block_d * x_item         # x tile
                    + block_d * bc * ct_item      # ct tile
                    + 8 * bc * 4                  # constants tile
                    + bb * bc * out_item)         # output tile
        scratch = 0
        if use_mxu:
            per_step += bb * 4                    # ||x||^2 tile
            scratch = bb * bc * 4                 # f32 accumulator
        return 2 * per_step + scratch             # double-buffered in/out

    while working(block_b, block_c) > budget:
        if block_b > 8:
            block_b = max(8, _round_up(block_b // 2, 8))
        elif block_c > 128:
            block_c = max(128, _round_up(block_c // 2, 128))
        else:
            break

    B_pad = _round_up(B, block_b)
    C_pad = _round_up(C, block_c)

    # v7x megacore: guarantee >= 2 grid steps along a parallel axis when possible
    if (B_pad // block_b) * (C_pad // block_c) == 1:
        if block_b >= 16:
            block_b = _round_up(block_b // 2, 8)
        elif block_c >= 256:
            block_c //= 2
        B_pad = _round_up(B, block_b)
        C_pad = _round_up(C, block_c)

    vmem_limit = int(min(budget,
                         max(working(block_b, block_c) * 5 // 4 + (2 << 20),
                             16 * 1024 * 1024)))

    # ---- grid-invariant work (done once, here) -------------------------------
    params = jnp.zeros((8, C_pad), jnp.float32)
    params = params.at[0, :C].set(jnp.sum(c32 * c32, axis=1))      # ||c||^2
    params = params.at[1, :C].set(inv)                             # 1/(s+eps)
    params = params.at[2, :C].set(4.0 * inv * inv)                 # 4/(s+eps)^2
    params = params.at[3, :C].set(2.0 * inv)                       # 2/(s+eps)

    x_p = jnp.zeros((B_pad, D_pad), x.dtype).at[:B, :D].set(x)

    cost = pl.CostEstimate(
        flops=2 * B * C * D + 6 * B * C,
        transcendentals=B * C,
        bytes_accessed=(B * D * x_item + C * D * ct_item
                        + B * C * out_item + 8 * C * 4 + B * 4),
    )

    if use_mxu:
        # centers pre-transposed with the -2 factor folded in: (D_pad, C_pad)
        ct = jnp.zeros((D_pad, C_pad), centers.dtype).at[:D, :C].set(
            (-2.0 * centers.T).astype(centers.dtype))
        # ||x||^2 hoisted out of the kernel (f32, exact)
        xn = jnp.zeros((B_pad, 1), jnp.float32).at[:B, :].set(
            jnp.sum(x.astype(jnp.float32) ** 2, axis=1, keepdims=True))

        grid = (B_pad // block_b, C_pad // block_c, D_pad // block_d)
        kernel = functools.partial(_rbf_mxu_kernel, der=der)
        out_padded = pl.pallas_call(
            kernel,
            out_shape=jax.ShapeDtypeStruct((B_pad, C_pad), out_dtype),
            grid_spec=pltpu.PrefetchScalarGridSpec(
                num_scalar_prefetch=0,
                grid=grid,
                in_specs=[
                    pl.BlockSpec((block_b, 1), lambda i, j, k: (i, 0)),        # ||x||^2
                    pl.BlockSpec((block_b, block_d), lambda i, j, k: (i, k)),  # x
                    pl.BlockSpec((block_d, block_c), lambda i, j, k: (k, j)),  # -2 c^T
                    pl.BlockSpec((8, block_c), lambda i, j, k: (0, j)),        # consts
                ],
                out_specs=pl.BlockSpec((block_b, block_c), lambda i, j, k: (i, j)),
                scratch_shapes=[pltpu.VMEM((block_b, block_c), jnp.float32)],
            ),
            compiler_params=pltpu.CompilerParams(
                dimension_semantics=("parallel", "parallel", "arbitrary"),
                vmem_limit_bytes=vmem_limit,
            ),
            cost_estimate=cost,
        )(xn, x_p, ct, params)
    else:
        ct = jnp.zeros((D, C_pad), centers.dtype).at[:, :C].set(centers.T)
        grid = (B_pad // block_b, C_pad // block_c)
        kernel = functools.partial(_rbf_vpu_kernel, der=der, d=D)
        out_padded = pl.pallas_call(
            kernel,
            out_shape=jax.ShapeDtypeStruct((B_pad, C_pad), out_dtype),
            grid_spec=pltpu.PrefetchScalarGridSpec(
                num_scalar_prefetch=0,
                grid=grid,
                in_specs=[
                    pl.BlockSpec((block_b, D), lambda i, j: (i, 0)),           # x
                    pl.BlockSpec((D, block_c), lambda i, j: (0, j)),           # c^T
                    pl.BlockSpec((8, block_c), lambda i, j: (0, j)),           # consts
                ],
                out_specs=pl.BlockSpec((block_b, block_c), lambda i, j: (i, j)),
            ),
            compiler_params=pltpu.CompilerParams(
                dimension_semantics=("parallel", "parallel"),
                vmem_limit_bytes=vmem_limit,
            ),
            cost_estimate=cost,
        )(x_p, ct, params)

    return out_padded[:B, :C]


def rbf_reference(x, centers, sigma, der=0):
    """Pure-JAX reference mirroring the PyTorch forward."""
    delta = x[:, None, :].astype(jnp.float32) - centers[None, :, :].astype(jnp.float32)
    X = jnp.sum(delta ** 2, axis=2)
    eps = 1e-6
    s = sigma.astype(jnp.float32) + eps
    if der == 0:
        return jnp.exp(-X / s)
    elif der == 2:
        return (4.0 * X / (s ** 2) - 2.0 / s) * jnp.exp(-X / s)


if __name__ == "__main__":
    key = jax.random.PRNGKey(0)
    kx, kc, kx2, kc2, kx3, kc3 = jax.random.split(key, 6)

    # --- small-D case (VPU path), typical quantumdraw usage (1-3 dims) --------
    B, D, C = 8, 2, 32
    x = jax.random.normal(kx, (B, D), dtype=jnp.float32)
    centers = jax.random.uniform(kc, (C, D), dtype=jnp.float32, minval=-2.0, maxval=2.0)
    sigma = jnp.ones((C,), dtype=jnp.float32)

    out = jax.block_until_ready(rbf_forward(x, centers, sigma, der=0))
    ref = rbf_reference(x, centers, sigma, der=0)
    assert out.shape == (B, C)
    assert jnp.allclose(out, ref, atol=1e-5, rtol=1e-5)

    out2 = jax.block_until_ready(rbf_forward(x, centers, sigma, der=2))
    ref2 = rbf_reference(x, centers, sigma, der=2)
    assert jnp.allclose(out2, ref2, atol=1e-4, rtol=1e-4)

    # --- larger-D case (MXU path, single K step, padding + megacore split) ----
    B2, D2, C2 = 40, 128, 200
    x_b = jax.random.normal(kx2, (B2, D2), dtype=jnp.float32)
    c_b = jax.random.uniform(kc2, (C2, D2), dtype=jnp.float32, minval=-1.0, maxval=1.0)
    s_b = 0.5 * jnp.ones((C2,), dtype=jnp.float32)

    out_b = jax.block_until_ready(rbf_forward(x_b, c_b, s_b, der=0))
    ref_b = rbf_reference(x_b, c_b, s_b, der=0)
    assert out_b.shape == (B2, C2)
    assert jnp.allclose(out_b, ref_b, atol=1e-4, rtol=1e-4)

    out_b2 = jax.block_until_ready(rbf_forward(x_b, c_b, s_b, der=2))
    ref_b2 = rbf_reference(x_b, c_b, s_b, der=2)
    assert jnp.allclose(out_b2, ref_b2, atol=1e-3, rtol=1e-3)

    # --- very large D: exercises the K-tiled accumulator path (D > 512) -------
    B3, D3, C3 = 16, 600, 160
    scale = 1.0 / jnp.sqrt(jnp.float32(D3))
    x_c = jax.random.normal(kx3, (B3, D3), dtype=jnp.float32) * scale
    c_c = jax.random.uniform(kc3, (C3, D3), dtype=jnp.float32,
                             minval=-1.0, maxval=1.0) * scale
    s_c = jnp.ones((C3,), dtype=jnp.float32)

    out_c = jax.block_until_ready(rbf_forward(x_c, c_c, s_c, der=0))
    ref_c = rbf_reference(x_c, c_c, s_c, der=0)
    assert out_c.shape == (B3, C3)
    assert jnp.allclose(out_c, ref_c, atol=5e-4, rtol=1e-3)

    out_c2 = jax.block_until_ready(rbf_forward(x_c, c_c, s_c, der=2))
    ref_c2 = rbf_reference(x_c, c_c, s_c, der=2)
    assert jnp.allclose(out_c2, ref_c2, atol=2e-3, rtol=2e-3)

    print("KERNEL_OK")
</pallas_src>

<mosaic_0001>
module attributes {stable_mosaic.version = 11 : i64} {
  func.func @_rbf_vpu_kernel(%arg0: i32, %arg1: i32, %arg2: memref<8x2xf32, #tpu.memory_space<vmem>>, %arg3: memref<2x128xf32, #tpu.memory_space<vmem>>, %arg4: memref<8x128xf32, #tpu.memory_space<vmem>>, %arg5: memref<8x128xf32, #tpu.memory_space<vmem>>) attributes {dimension_semantics = [#tpu.dimension_semantics<parallel>, #tpu.dimension_semantics<parallel>], iteration_bounds = array<i64: 1, 1>, scalar_prefetch = 0 : i64, scratch_operands = 0 : i64, tpu.core_type = #tpu.core_type<tc>, window_params = [{transform_indices = @transform_0, window_bounds = array<i64: 8, 2>}, {transform_indices = @transform_1, window_bounds = array<i64: 2, 128>}, {transform_indices = @transform_2, window_bounds = array<i64: 8, 128>}, {transform_indices = @transform_3, window_bounds = array<i64: 8, 128>}]} {
    %c0 = arith.constant 0 : index
    %c0_0 = arith.constant 0 : index
    %0 = vector.load %arg2[%c0, %c0_0] : memref<8x2xf32, #tpu.memory_space<vmem>>, vector<8x2xf32>
    %c0_1 = arith.constant 0 : index
    %c0_2 = arith.constant 0 : index
    %1 = vector.load %arg3[%c0_1, %c0_2] : memref<2x128xf32, #tpu.memory_space<vmem>>, vector<2x128xf32>
    %c0_3 = arith.constant 0 : index
    %c0_4 = arith.constant 0 : index
    %2 = vector.load %arg4[%c0_3, %c0_4] : memref<8x128xf32, #tpu.memory_space<vmem>>, vector<8x128xf32>
    %3 = vector.extract_strided_slice %2 {offsets = [1, 0], sizes = [1, 128], strides = [1, 1]} : vector<8x128xf32> to vector<1x128xf32>
    %4 = vector.extract_strided_slice %0 {offsets = [0, 0], sizes = [8, 1], strides = [1, 1]} : vector<8x2xf32> to vector<8x1xf32>
    %5 = vector.extract_strided_slice %1 {offsets = [0, 0], sizes = [1, 128], strides = [1, 1]} : vector<2x128xf32> to vector<1x128xf32>
    %6 = vector.broadcast %4 : vector<8x1xf32> to vector<8x128xf32>
    %7 = vector.broadcast %5 : vector<1x128xf32> to vector<8x128xf32>
    %8 = arith.subf %6, %7 : vector<8x128xf32>
    %9 = arith.mulf %8, %8 : vector<8x128xf32>
    %10 = vector.extract_strided_slice %0 {offsets = [0, 1], sizes = [8, 1], strides = [1, 1]} : vector<8x2xf32> to vector<8x1xf32>
    %11 = vector.extract_strided_slice %1 {offsets = [1, 0], sizes = [1, 128], strides = [1, 1]} : vector<2x128xf32> to vector<1x128xf32>
    %12 = vector.broadcast %10 : vector<8x1xf32> to vector<8x128xf32>
    %13 = vector.broadcast %11 : vector<1x128xf32> to vector<8x128xf32>
    %14 = arith.subf %12, %13 : vector<8x128xf32>
    %15 = arith.mulf %14, %14 : vector<8x128xf32>
    %16 = arith.addf %9, %15 : vector<8x128xf32>
    %cst = arith.constant 0.000000e+00 : f32
    %17 = vector.broadcast %cst : f32 to vector<8x128xf32>
    %18 = arith.subf %17, %16 : vector<8x128xf32>
    %19 = vector.broadcast %3 : vector<1x128xf32> to vector<8x128xf32>
    %20 = arith.mulf %18, %19 : vector<8x128xf32>
    %21 = math.exp %20 : vector<8x128xf32>
    %c0_5 = arith.constant 0 : index
    %c0_6 = arith.constant 0 : index
    %22 = vector.load %arg5[%c0_5, %c0_6] : memref<8x128xf32, #tpu.memory_space<vmem>>, vector<8x128xf32>
    tpu.vector_store %arg5[%c0_5, %c0_6], %21 {strides = array<i32>} : memref<8x128xf32, #tpu.memory_space<vmem>>, vector<8x128xf32>,
    return
  }
  func.func @transform_0(%arg0: i32, %arg1: i32) -> (i32, i32) {
    %c0_i32 = arith.constant 0 : i32
    %c0_i32_0 = arith.constant 0 : i32
    return %arg0, %c0_i32 : i32, i32
  }
  func.func @transform_1(%arg0: i32, %arg1: i32) -> (i32, i32) {
    %c0_i32 = arith.constant 0 : i32
    %c0_i32_0 = arith.constant 0 : i32
    return %c0_i32, %arg1 : i32, i32
  }
  func.func @transform_2(%arg0: i32, %arg1: i32) -> (i32, i32) {
    %c0_i32 = arith.constant 0 : i32
    %c0_i32_0 = arith.constant 0 : i32
    return %c0_i32, %arg1 : i32, i32
  }
  func.func @transform_3(%arg0: i32, %arg1: i32) -> (i32, i32) {
    %c0_i32 = arith.constant 0 : i32
    return %arg0, %arg1 : i32, i32
  }
}

</mosaic_0001>

<bundles_post_ra>
// kernel: tpu_custom_call.1
= control target key start
LH: loop header
LB: loop body
LE: loop exit
PB: predicated region body
PF: predicated region fallthrough
CT: control target
= control target key end

     0   :  { %v94_v1 = vmov 0   ;;  %s138_s0 = inlined_call_operand.vmem [shape: f32[8,2], index: 0, kind: input, shape index: {}]   ;;  %s139_s1 = inlined_call_operand.vmem [shape: f32[2,128], index: 1, kind: input, shape index: {}]   ;;  %s140_s2 = inlined_call_operand.vmem [shape: f32[8,128], index: 2, kind: input, shape index: {}]   ;;  %s141_s3 = inlined_call_operand.hbm [shape: f32[8,128], index: 3, kind: output, shape index: {}]  }
   0x1   :  { %v15_v0 = vld [vmem:[%s138_s0] sm:$0xff]  ;;  %66 = vset.pattern.permute.xlu0 %v94_v1 }
   0x2   :  { %8 = vsyncpa [#allocation3], 0  ;;  %20 = vperm.xlu0 %66, %v15_v0   ;;  %v95_v2 = vmov 1   ;;  %v23_v3 = vlaneseq  ;;  %v16_v6 = vld [vmem:[%s139_s1] sm:$0x3]  ;;  %s96_s1 = smov [#allocation2]  }
   0x3   :  { %v17_v14 = vld [vmem:[%s140_s2] sm:$0xff]  ;;  %s55_s17 = sshll.u32 %s96_s1, 4  ;;  %s56_s17 = int_to_ptr.vmem [resolvable:$true] %s55_s17 }
   0x4   :  { %v24_v4 = vshrl.u32 %v23_v3, 7  ;;  %s70_s18 = scalar_lea.vmem %s56_s17, 128  ;;  %p75_p1 = scmp.lt.s32.totalorder %s56_s17, %s56_s17 }
   0x5   :  { %p71_p0 = scmp.ne.s32.totalorder %s56_s17, %s70_s18  ;;  %p76_p2 = scmp.lt.s32.totalorder %s70_s18, %s70_s18 }
   0x6   :  { %67 = vset.pattern.permute.xlu0 %v95_v2  ;;  %v25_v5 = vsub.s32 0, %v24_v4  ;;  %v35_v7 = vsub.s32 1, %v24_v4 }
   0x7   :  { %30 = vperm.xlu0 %67, %v15_v0   ;;  %p77_p3 = por %p76_p2, %p75_p1 }
   0x8   :  { %v26_v8 = vrot.slane %v16_v6, %v25_v5  ;;  %v36_v10 = vrot.slane %v16_v6, %v35_v7  ;;  %v44_v17 = vrot.slane %v17_v14, %v35_v7 }
   0x9   :  { %p78_p4 = pnand %p77_p3, %p71_p0 }
  0x81   :  { %v21_v9 = vpop.permute.xlu0 %20 }
  0x82   :  { %v27_v11 = vsub.f32 %v21_v9, %v26_v8 }
  0x84   :  { %v28_v15 = vmul.f32 %v27_v11, %v27_v11 }
  0x86   :  { %v31_v12 = vpop.permute.xlu0 %30 }
  0x87   :  { %v37_v13 = vsub.f32 %v31_v12, %v36_v10 }
  0x89   :  { %v38_v16 = vmul.f32 %v37_v13, %v37_v13 }
  0x8b   :  { %v39_v18 = vadd.f32 %v38_v16, %v28_v15 }
  0x8d   :  { %v40_v19 = vsub.f32 0.0, %v39_v18 }
  0x8f   :  { %v45_v20 = vmul.f32 %v44_v17, %v40_v19 }
  0x91   :  { %v46_v21 = vmul.f32 1.442695, %v45_v20 }
  0x93   :  { %68 = vpow2.f32 %v46_v21 }
  0x9d   :  { %v69_v22 = vpop.eup %68 }
  0x9e   :  { %48 = vst [vmem:[#allocation2] sm:$0xff] %v69_v22 }
  0x9f   :  { %81 = shalt.err (!%p78_p4)
}
  0xa0   :  { %s82_s20 = scalar_lea.hbm %s141_s3, 128 }
  0xa1   :  { %p83_p5 = scmp.ne.s32.totalorder %s141_s3, %s82_s20  ;;  %p86_p6 = scmp.lt.u32.totalorder %s82_s20, %s141_s3 }
  0xa3   :  { %p88_p7 = pnand %p86_p6, %p83_p5 }
  0xa5   :  { %91 = shalt.err (!%p88_p7)
}
  0xa6   :  { %58 = dma.vmem_to_hbm [thread:$0]  %s56_s17, 128, %s141_s3, [#allocation3]  }
  0xa7   :  { %92 = dma.done.wait [#allocation3], 128  }
  0xa8   :  { %93 = vsyncadd [#allocation3], 4294967168 }
  0xa9   :  { %62 = vsyncpa [#allocation3], 1 }

</bundles_post_ra>
